<compile_context>
chip_gen: v7x
topology: tpu7x:2x2x1
jax: 0.10.0
libtpu: 0.0.40
codegen_flags: <defaults>
</compile_context>

<pallas_src>
import functools

import jax
import jax.numpy as jnp
from jax.experimental import pallas as pl
from jax.experimental.pallas import tpu as pltpu

_LANE = 128      # lane width  (last dim tile)
_SUBLANE = 8     # sublane width (second-to-last dim tile)


def _round_up(x, m):
    return -(-x // m) * m


# ----------------------------- Pallas kernel ------------------------------ #
def _make_policy_kernel(n_linear, sig_flags):
    """Build the feature-major MLP kernel body.

    The final per-action activation (sigmoid on rows where sig_flags[i] is
    True, identity elsewhere) is baked in statically.
    """
    # TODO(synk): only "relu" intermediate and per-action sigmoid/identity
    # final activations are implemented (the synthetic config); arbitrary
    # getattr(F, name) activations of the generic module are not translated.
    n_act = len(sig_flags)
    n_sig = sum(bool(f) for f in sig_flags)

    def kernel(x_ref, *refs):
        out_ref = refs[-1]
        h = x_ref[...]                                   # (Din, tb) lane-dense
        for li in range(n_linear):
            w = refs[2 * li][...]                        # (out_p, in_p)
            b = refs[2 * li + 1][...]                    # (out_p, 1)
            h = jnp.dot(w, h, preferred_element_type=jnp.float32) + b
            if li + 1 < n_linear:
                h = jnp.maximum(h, 0.0)                  # relu intermediate

        # Final activation(s), resolved statically at trace time.  Actions are
        # rows (axis 0) in the feature-major layout.
        if n_sig == 0:
            out = h
        elif n_sig == n_act:
            out = jax.nn.sigmoid(h)
        else:
            row = jax.lax.broadcasted_iota(jnp.int32, h.shape, 0)
            mask = functools.reduce(
                jnp.logical_or,
                [row == i for i, f in enumerate(sig_flags) if f])
            out = jnp.where(mask, jax.nn.sigmoid(h), h)
        out_ref[...] = out

    return kernel


# --------------------- one-time parameter preparation ---------------------- #
def prepare_policy_params(layers):
    """Transpose & tile-pad the MLP parameters ONCE at init time.

    `layers` is a list of (w, b) with w in (fan_in, fan_out) layout (matching
    the pure-JAX reference).  For the feature-major kernel, weights are stored
    (fan_out_padded, fan_in_padded) so the kernel computes W @ x.  Output dims
    are padded to the 8-sublane tile; contraction dims match the previous
    layer's padded output.  Zero padding keeps the math exact: padded hidden
    rows stay 0 through ReLU and meet zero weight columns in the next layer.
    """
    prepped = []
    prev_out_p = layers[0][0].shape[0]          # = Din, left at natural size
    for w, b in layers:
        fan_in, fan_out = w.shape
        in_p = prev_out_p
        out_p = _round_up(max(fan_out, _SUBLANE), _SUBLANE)
        w_t = jnp.zeros((out_p, in_p), jnp.float32)
        w_t = w_t.at[:fan_out, :fan_in].set(w.T.astype(jnp.float32))
        b_t = jnp.zeros((out_p, 1), jnp.float32)
        b_t = b_t.at[:fan_out, 0].set(b.astype(jnp.float32))
        prepped.append((w_t, b_t))
        prev_out_p = out_p
    return prepped


# ------------------------------ forward pass ------------------------------ #
@functools.partial(jax.jit, static_argnames=("sig_flags", "n_actions", "block_b"))
def policy_forward(state, prepped_params, sig_flags, n_actions, block_b=4096):
    """Run the Policy MLP forward pass in a single fused Pallas kernel.

    state:          (B, Nstates + T) float32
    prepped_params: output of prepare_policy_params (padded once at init)
    sig_flags:      static tuple[bool], True where sigmoid applies per action
    block_b:        batch-tile size in lanes (rounded to a multiple of 128)
    """
    B, Din = state.shape
    n_linear = len(prepped_params)
    Ap = prepped_params[-1][0].shape[0]

    # Batch lives in the lane dimension: tiles are multiples of 128 lanes.
    Bp_min = _round_up(max(B, _LANE), _LANE)
    tb = min(_round_up(block_b, _LANE), Bp_min)
    # v7x: guarantee >= 2 grid steps for large batches so the "parallel" axis
    # shards across both TensorCores.
    if Bp_min >= 1024:
        tb = min(tb, _round_up(pl.cdiv(Bp_min, 2), _LANE))
    Bp = _round_up(Bp_min, tb)                  # no partial edge blocks
    grid = (Bp // tb,)

    # Feature-major, lane-dense input: (Din, Bp).  Only the batch (lane) dim
    # is zero-padded; the feature dim keeps its natural size (8).
    x = state.astype(jnp.float32).T
    if Bp != B:
        x = jnp.pad(x, ((0, 0), (0, Bp - B)))

    # Weights/biases are fully resident: constant index_map means Pallas does
    # not re-DMA them between grid steps.
    in_specs = [pl.BlockSpec((Din, tb), lambda i: (0, i))]
    flat_params = []
    for w, b in prepped_params:
        in_specs.append(pl.BlockSpec(w.shape, lambda i: (0, 0)))
        in_specs.append(pl.BlockSpec(b.shape, lambda i: (0, 0)))
        flat_params.extend((w, b))

    out_p = pl.pallas_call(
        _make_policy_kernel(n_linear, sig_flags),
        out_shape=jax.ShapeDtypeStruct((Ap, Bp), jnp.float32),
        grid=grid,
        in_specs=in_specs,
        out_specs=pl.BlockSpec((Ap, tb), lambda i: (0, i)),
        compiler_params=pltpu.CompilerParams(
            dimension_semantics=("parallel",)),
    )(x, *flat_params)

    # (Ap, Bp) -> (B, n_actions); the transpose is tiny (2 x B floats).
    return out_p[:n_actions, :B].T


# -------------------------- parameter construction ------------------------ #
def init_linear(key, fan_in, fan_out):
    """Deterministic init mimicking torch.nn.Linear default U(-1/sqrt(in), 1/sqrt(in))."""
    kw, kb = jax.random.split(key)
    bound = 1.0 / jnp.sqrt(jnp.float32(fan_in))
    # Stored (in, out) for the reference; the kernel uses the transposed copy.
    w = jax.random.uniform(kw, (fan_in, fan_out), jnp.float32, -bound, bound)
    b = jax.random.uniform(kb, (fan_out,), jnp.float32, -bound, bound)
    return w, b


def reference_forward(state, layers, sig_flags):
    """Pure-JAX reference matching the PyTorch forward semantics."""
    h = state
    for (w, b) in layers[:-1]:
        h = jnp.maximum(h @ w + b, 0.0)
    w, b = layers[-1]
    s_noact = h @ w + b
    cols = []
    for i_a in range(s_noact.shape[1]):
        col = s_noact[:, i_a:i_a + 1]
        if sig_flags[i_a]:
            col = jax.nn.sigmoid(col)
        cols.append(col)
    return jnp.concatenate(cols, axis=1)


if __name__ == "__main__":
    # Synthetic config
    Nstates, T, Nactions = 6, 2, 2
    Nneurons_policy = (32, 32)
    Din = Nstates + T

    key = jax.random.PRNGKey(0)
    keys = jax.random.split(key, 6)

    dims = [Din, *Nneurons_policy, Nactions]
    layers = [init_linear(keys[i], dims[i], dims[i + 1]) for i in range(len(dims) - 1)]

    # policy_activation_final = ["sigmoid", None] -> static per-action flags.
    sig_flags = (True, False)

    # One-time parameter transpose + padding (hoisted out of the call path).
    prepped = prepare_policy_params(layers)

    def check(B, seed_key, block_b):
        state = jax.random.normal(seed_key, (B, Din), jnp.float32)
        out = policy_forward(state, prepped, sig_flags, Nactions, block_b=block_b)
        out = jax.block_until_ready(out)
        ref = reference_forward(state, layers, sig_flags)
        assert out.shape == (B, Nactions), out.shape
        err = float(jnp.max(jnp.abs(out - ref)))
        assert jnp.allclose(out, ref, atol=1e-4, rtol=1e-4), err

    # 1) Tiny batch: single 128-lane block, grid=(1,).
    check(8, keys[3], 4096)
    # 2) Multi-block "parallel" grid: 384 rows, 128-lane tiles -> grid=(3,).
    check(384, keys[4], 128)
    # 3) Batch >= 1024: tile capped at ceil(Bp/2) -> grid=(2,) (both v7x TCs).
    check(1200, keys[5], 4096)

    print("KERNEL_OK")
</pallas_src>

<mosaic_0001>
module attributes {stable_mosaic.version = 11 : i64} {
  func.func @kernel(%arg0: i32, %arg1: memref<8x128xf32, #tpu.memory_space<vmem>>, %arg2: memref<32x8xf32, #tpu.memory_space<vmem>>, %arg3: memref<32x1xf32, #tpu.memory_space<vmem>>, %arg4: memref<32x32xf32, #tpu.memory_space<vmem>>, %arg5: memref<32x1xf32, #tpu.memory_space<vmem>>, %arg6: memref<8x32xf32, #tpu.memory_space<vmem>>, %arg7: memref<8x1xf32, #tpu.memory_space<vmem>>, %arg8: memref<8x128xf32, #tpu.memory_space<vmem>>) attributes {dimension_semantics = [#tpu.dimension_semantics<parallel>], iteration_bounds = array<i64: 1>, scalar_prefetch = 0 : i64, scratch_operands = 0 : i64, tpu.core_type = #tpu.core_type<tc>, window_params = [{transform_indices = @transform_0, window_bounds = array<i64: 8, 128>}, {pipeline_mode = #tpu.pipeline_mode<synchronous>, transform_indices = @transform_1, window_bounds = array<i64: 32, 8>}, {pipeline_mode = #tpu.pipeline_mode<synchronous>, transform_indices = @transform_2, window_bounds = array<i64: 32, 1>}, {pipeline_mode = #tpu.pipeline_mode<synchronous>, transform_indices = @transform_3, window_bounds = array<i64: 32, 32>}, {pipeline_mode = #tpu.pipeline_mode<synchronous>, transform_indices = @transform_4, window_bounds = array<i64: 32, 1>}, {pipeline_mode = #tpu.pipeline_mode<synchronous>, transform_indices = @transform_5, window_bounds = array<i64: 8, 32>}, {pipeline_mode = #tpu.pipeline_mode<synchronous>, transform_indices = @transform_6, window_bounds = array<i64: 8, 1>}, {transform_indices = @transform_7, window_bounds = array<i64: 8, 128>}]} {
    %c0 = arith.constant 0 : index
    %c0_0 = arith.constant 0 : index
    %0 = vector.load %arg1[%c0, %c0_0] : memref<8x128xf32, #tpu.memory_space<vmem>>, vector<8x128xf32>
    %c0_1 = arith.constant 0 : index
    %c0_2 = arith.constant 0 : index
    %1 = vector.load %arg2[%c0_1, %c0_2] : memref<32x8xf32, #tpu.memory_space<vmem>>, vector<32x8xf32>
    %c0_3 = arith.constant 0 : index
    %c0_4 = arith.constant 0 : index
    %2 = vector.load %arg3[%c0_3, %c0_4] : memref<32x1xf32, #tpu.memory_space<vmem>>, vector<32x1xf32>
    %cst = arith.constant dense<0.000000e+00> : vector<32x128xf32>
    %3 = tpu.matmul %1, %0, %cst {dimension_numbers = #tpu.dot_dimension_numbers<[1], [0], [0], [1], [0, 0, 1, 1], [], []>} : vector<32x8xf32>, vector<8x128xf32>, vector<32x128xf32> -> vector<32x128xf32>
    %4 = vector.broadcast %2 : vector<32x1xf32> to vector<32x128xf32>
    %5 = arith.addf %3, %4 : vector<32x128xf32>
    %cst_5 = arith.constant 0.000000e+00 : f32
    %6 = vector.broadcast %cst_5 : f32 to vector<32x128xf32>
    %7 = arith.maximumf %5, %6 : vector<32x128xf32>
    %c0_6 = arith.constant 0 : index
    %c0_7 = arith.constant 0 : index
    %8 = vector.load %arg4[%c0_6, %c0_7] : memref<32x32xf32, #tpu.memory_space<vmem>>, vector<32x32xf32>
    %c0_8 = arith.constant 0 : index
    %c0_9 = arith.constant 0 : index
    %9 = vector.load %arg5[%c0_8, %c0_9] : memref<32x1xf32, #tpu.memory_space<vmem>>, vector<32x1xf32>
    %cst_10 = arith.constant dense<0.000000e+00> : vector<32x128xf32>
    %10 = tpu.matmul %8, %7, %cst_10 {dimension_numbers = #tpu.dot_dimension_numbers<[1], [0], [0], [1], [0, 0, 1, 1], [], []>} : vector<32x32xf32>, vector<32x128xf32>, vector<32x128xf32> -> vector<32x128xf32>
    %11 = vector.broadcast %9 : vector<32x1xf32> to vector<32x128xf32>
    %12 = arith.addf %10, %11 : vector<32x128xf32>
    %cst_11 = arith.constant 0.000000e+00 : f32
    %13 = vector.broadcast %cst_11 : f32 to vector<32x128xf32>
    %14 = arith.maximumf %12, %13 : vector<32x128xf32>
    %c0_12 = arith.constant 0 : index
    %c0_13 = arith.constant 0 : index
    %15 = vector.load %arg6[%c0_12, %c0_13] : memref<8x32xf32, #tpu.memory_space<vmem>>, vector<8x32xf32>
    %c0_14 = arith.constant 0 : index
    %c0_15 = arith.constant 0 : index
    %16 = vector.load %arg7[%c0_14, %c0_15] : memref<8x1xf32, #tpu.memory_space<vmem>>, vector<8x1xf32>
    %cst_16 = arith.constant dense<0.000000e+00> : vector<8x128xf32>
    %17 = tpu.matmul %15, %14, %cst_16 {dimension_numbers = #tpu.dot_dimension_numbers<[1], [0], [0], [1], [0, 0, 1, 1], [], []>} : vector<8x32xf32>, vector<32x128xf32>, vector<8x128xf32> -> vector<8x128xf32>
    %18 = vector.broadcast %16 : vector<8x1xf32> to vector<8x128xf32>
    %19 = arith.addf %17, %18 : vector<8x128xf32>
    %20 = tpu.iota {dimensions = array<i32: 0>} : vector<8x128xi32>
    %c0_i32 = arith.constant 0 : i32
    %21 = vector.broadcast %c0_i32 : i32 to vector<8x128xi32>
    %22 = arith.cmpi eq, %20, %21 : vector<8x128xi32>
    %23 = arith.negf %19 : vector<8x128xf32>
    %24 = math.exp %23 : vector<8x128xf32>
    %cst_17 = arith.constant 1.000000e+00 : f32
    %25 = vector.broadcast %cst_17 : f32 to vector<8x128xf32>
    %26 = arith.addf %25, %24 : vector<8x128xf32>
    %27 = arith.divf %25, %26 : vector<8x128xf32>
    %28 = arith.select %22, %27, %19 : vector<8x128xi1>, vector<8x128xf32>
    %c0_18 = arith.constant 0 : index
    %c0_19 = arith.constant 0 : index
    %29 = vector.load %arg8[%c0_18, %c0_19] : memref<8x128xf32, #tpu.memory_space<vmem>>, vector<8x128xf32>
    tpu.vector_store %arg8[%c0_18, %c0_19], %28 {strides = array<i32>} : memref<8x128xf32, #tpu.memory_space<vmem>>, vector<8x128xf32>,
    return
  }
  func.func @transform_0(%arg0: i32) -> (i32, i32) {
    %c0_i32 = arith.constant 0 : i32
    %c0_i32_0 = arith.constant 0 : i32
    return %c0_i32, %arg0 : i32, i32
  }
  func.func @transform_1(%arg0: i32) -> (i32, i32) {
    %c0_i32 = arith.constant 0 : i32
    %c0_i32_0 = arith.constant 0 : i32
    %c0_i32_1 = arith.constant 0 : i32
    return %c0_i32, %c0_i32_0 : i32, i32
  }
  func.func @transform_2(%arg0: i32) -> (i32, i32) {
    %c0_i32 = arith.constant 0 : i32
    %c0_i32_0 = arith.constant 0 : i32
    %c0_i32_1 = arith.constant 0 : i32
    return %c0_i32, %c0_i32_0 : i32, i32
  }
  func.func @transform_3(%arg0: i32) -> (i32, i32) {
    %c0_i32 = arith.constant 0 : i32
    %c0_i32_0 = arith.constant 0 : i32
    %c0_i32_1 = arith.constant 0 : i32
    return %c0_i32, %c0_i32_0 : i32, i32
  }
  func.func @transform_4(%arg0: i32) -> (i32, i32) {
    %c0_i32 = arith.constant 0 : i32
    %c0_i32_0 = arith.constant 0 : i32
    %c0_i32_1 = arith.constant 0 : i32
    return %c0_i32, %c0_i32_0 : i32, i32
  }
  func.func @transform_5(%arg0: i32) -> (i32, i32) {
    %c0_i32 = arith.constant 0 : i32
    %c0_i32_0 = arith.constant 0 : i32
    %c0_i32_1 = arith.constant 0 : i32
    return %c0_i32, %c0_i32_0 : i32, i32
  }
  func.func @transform_6(%arg0: i32) -> (i32, i32) {
    %c0_i32 = arith.constant 0 : i32
    %c0_i32_0 = arith.constant 0 : i32
    %c0_i32_1 = arith.constant 0 : i32
    return %c0_i32, %c0_i32_0 : i32, i32
  }
  func.func @transform_7(%arg0: i32) -> (i32, i32) {
    %c0_i32 = arith.constant 0 : i32
    %c0_i32_0 = arith.constant 0 : i32
    return %c0_i32, %arg0 : i32, i32
  }
}

</mosaic_0001>

<bundles_post_ra>
// kernel: policy_forward.1
= control target key start
LH: loop header
LB: loop body
LE: loop exit
PB: predicated region body
PF: predicated region fallthrough
CT: control target
= control target key end

     0   :  { %vm55_vm0 = vcmask 64512   ;;  %v467_v3 = vmov 0   ;;  %vm185_vm1 = vcmask 261120   ;;  %v468_v37 = vmov 0.0|0.0   ;;  %s580_s0 = inlined_call_operand.vmem [shape: f32[8,128], index: 0, kind: input, shape index: {}]   ;;  %s581_s1 = inlined_call_operand.vmem [shape: f32[32,8], index: 1, kind: input, shape index: {}]   ;;  %s582_s2 = inlined_call_operand.vmem [shape: f32[32,1], index: 2, kind: input, shape index: {}]   ;;  %s583_s4 = inlined_call_operand.vmem [shape: f32[32,1], index: 4, kind: input, shape index: {}]   ;;  %s584_s6 = inlined_call_operand.vmem [shape: f32[8,1], index: 6, kind: input, shape index: {}]   ;;  %s585_s3 = inlined_call_operand.vmem [shape: f32[32,32], index: 3, kind: input, shape index: {}]   ;;  %s586_s5 = inlined_call_operand.vmem [shape: f32[8,32], index: 5, kind: input, shape index: {}]   ;;  %s587_s7 = inlined_call_operand.vmem [shape: f32[8,128], index: 7, kind: output, shape index: {}]  }
   0x1   :  { %v26_v0 = vld [vmem:[%s580_s0] sm:$0xff]  ;;  %v28_v2 = vld [vmem:[%s581_s1 + $0x8] sm:$0xff]  ;;  %461 = vset.pattern.permute.xlu0 %v467_v3  ;;  %462 = vset.pattern.permute.xlu1 %v467_v3  ;;  %v29_v4 = vld [vmem:[%s581_s1 + $0x10] sm:$0xff]  ;;  %vm469_vm2 = vmmov 0   ;;  %v470_v38 = vmov 0.0  }
   0x2   :  { %v27_v1 = vld [vmem:[%s581_s1] sm:$0xff]  ;;  %410 = vmatprep.subr.mxu0 %v26_v0  ;;  %v33_v6 = vld [vmem:[%s582_s2 + $0x10] sm:$0xff]  ;;  %v32_v7 = vld [vmem:[%s582_s2 + $0x8] sm:$0xff] }
   0x3   :  { %412 = vmatprep.mubr.msk.f32.mxu0 %vm55_vm0, %v27_v1  ;;  %v31_v5 = vld [vmem:[%s582_s2] sm:$0xff]  ;;  %411 = vmatpush3.msra.mxu0 %v26_v0  ;;  %v30_v8 = vld [vmem:[%s581_s1 + $0x18] sm:$0xff]  ;;  %v162_v11 = vld [vmem:[%s583_s4 + $0x8] sm:$0xff]  ;;  %v367_v1 = vlaneseq }
   0x4   :  { %37 = vperm.xlu0 %461, %v31_v5   ;;  %413 = vmatmul.mubr.msk.f32.vlgmr.msra.gmra.mrb[0].mxu0 %vm55_vm0, %v28_v2  ;;  %v34_v9 = vld [vmem:[%s582_s2 + $0x18] sm:$0xff]  ;;  %v161_v10 = vld [vmem:[%s583_s4] sm:$0xff]  ;;  %v163_v12 = vld [vmem:[%s583_s4 + $0x10] sm:$0xff] }
   0x5   :  { %47 = vperm.xlu1 %462, %v33_v6   ;;  %415 = vmatprep.mubr.msk.f32.mxu0 %vm55_vm0, %v29_v4  ;;  %v164_v13 = vld [vmem:[%s583_s4 + $0x18] sm:$0xff]  ;;  %v288_v14 = vld [vmem:[%s584_s6] sm:$0xff]  ;;  %v158_v34 = vld [vmem:[%s585_s3 + $0x8] sm:$0xff]  ;;  %v368_v2 = vshrl.u32 %v367_v1, 7 }
   0x6   :  { %v157_v15 = vld [vmem:[%s585_s3] sm:$0xff]  ;;  %v159_v35 = vld [vmem:[%s585_s3 + $0x10] sm:$0xff]  ;;  %v160_v36 = vld [vmem:[%s585_s3 + $0x18] sm:$0xff]  ;;  %451 = vmatprep.subr.bf16.mxu0 %v468_v37 }
   0x7   :  { %426 = vmatprep.mubr.msk.f32.mxu1 %vm185_vm1, %v157_v15  ;;  %v287_v57 = vld [vmem:[%s586_s5] sm:$0xff]  ;;  %vm369_vm3 = vcmp.eq.s32.totalorder %v368_v2, 0 }
   0x8   :  { %42 = vperm.xlu0 %461, %v32_v7   ;;  %416 = vmatmul.mubr.msk.f32.gmra.mrb[2].mxu0 %vm55_vm0, %v30_v8 }
   0x9   :  { %52 = vperm.xlu1 %462, %v34_v9   ;;  %440 = vmatprep.mubr.msk.f32.mxu0 %vm469_vm2, %v470_v38 }
   0xc   :  { %167 = vperm.xlu0 %461, %v161_v10  }
   0xd   :  { %172 = vperm.xlu1 %462, %v162_v11  }
  0x10   :  { %177 = vperm.xlu0 %461, %v163_v12  }
  0x11   :  { %182 = vperm.xlu1 %462, %v164_v13  }
  0x14   :  { %291 = vperm.xlu0 %461, %v288_v14  }
  0x83   :  { %v38_v16 = vpop.permute.xlu0 %37 }
  0x84   :  { %v48_v17 = vpop.permute.xlu1 %47 }
  0x87   :  { %v43_v18 = vpop.permute.xlu0 %42 }
  0x88   :  { %v53_v24 = vpop.permute.xlu1 %52 }
  0x8b   :  { %v168_v40 = vpop.permute.xlu0 %167 }
  0x8c   :  { %v173_v39 = vpop.permute.xlu1 %172 }
  0x8f   :  { %v178_v49 = vpop.permute.xlu0 %177 }
  0x90   :  { %v183_v46 = vpop.permute.xlu1 %182 }
  0x93   :  { %v292_v58 = vpop.permute.xlu0 %291 }
  0xd7   :  { %v414_v19 = vpop.f32.mrb[0].mxu0 }
  0xd8   :  { %v140_v20 = vadd.f32 %v414_v19, %v43_v18  ;;  %v134_v21 = vpop.f32.mrb[1].mxu0 }
  0xd9   :  { %v135_v22 = vadd.f32 %v134_v21, %v38_v16 }
  0xda   :  { %v154_v23 = vmax.f32 %v140_v20, 0.0 }
  0xdb   :  { %v153_v25 = vmax.f32 %v135_v22, 0.0  ;;  %v417_v26 = vpop.f32.mrb[2].mxu0 }
  0xdc   :  { %v150_v27 = vadd.f32 %v417_v26, %v53_v24  ;;  %v144_v28 = vpop.f32.mrb[3].mxu0 }
  0xdd   :  { %v145_v29 = vadd.f32 %v144_v28, %v48_v17  ;;  %v443_v30 = vpack.c.bf16 %v154_v23, %v153_v25 }
  0xde   :  { %v156_v31 = vmax.f32 %v150_v27, 0.0 }
  0xdf   :  { %v155_v32 = vmax.f32 %v145_v29, 0.0  ;;  %444 = vmatprep.subr.bf16.mxu1 %v443_v30 }
  0xe0   :  { %446 = vmatpush3.bf16.msra.mxu1 %v443_v30 }
  0xe1   :  { %v447_v33 = vpack.c.bf16 %v156_v31, %v155_v32 }
  0xe3   :  { %448 = vmatprep.subr.bf16.mxu1 %v447_v33 }
  0xe4   :  { %450 = vmatpush3.bf16.msra.mxu1 %v447_v33 }
  0xe7   :  { %427 = vmatmul.mubr.msk.f32.vlgmr.msra.gmra.mrb[0].mxu1 %vm185_vm1, %v158_v34 }
  0xe8   :  { %429 = vmatprep.mubr.msk.f32.mxu1 %vm185_vm1, %v159_v35 }
  0xeb   :  { %430 = vmatmul.mubr.msk.f32.gmra.mrb[2].mxu1 %vm185_vm1, %v160_v36 }
 0x1ba   :  { %v428_v41 = vpop.f32.mrb[0].mxu1 }
 0x1bb   :  { %v270_v42 = vadd.f32 %v428_v41, %v173_v39  ;;  %v264_v43 = vpop.f32.mrb[1].mxu1 }
 0x1bc   :  { %v265_v44 = vadd.f32 %v264_v43, %v168_v40 }
 0x1bd   :  { %v284_v45 = vmax.f32 %v270_v42, 0.0 }
 0x1be   :  { %v283_v47 = vmax.f32 %v265_v44, 0.0  ;;  %v431_v48 = vpop.f32.mrb[2].mxu1 }
 0x1bf   :  { %v280_v50 = vadd.f32 %v431_v48, %v183_v46  ;;  %v274_v51 = vpop.f32.mrb[3].mxu1 }
 0x1c0   :  { %v452_v52 = vpack.c.bf16 %v284_v45, %v283_v47  ;;  %v275_v53 = vadd.f32 %v274_v51, %v178_v49 }
 0x1c1   :  { %v286_v54 = vmax.f32 %v280_v50, 0.0 }
 0x1c2   :  { %v285_v55 = vmax.f32 %v275_v53, 0.0  ;;  %453 = vmatpush3.bf16.msra.mxu0 %v452_v52 }
 0x1c3   :  { %454 = vmatprep.subr.bf16.mxu0 %v468_v37 }
 0x1c4   :  { %v455_v56 = vpack.c.bf16 %v286_v54, %v285_v55 }
 0x1c6   :  { %456 = vmatpush3.bf16.msra.mxu0 %v455_v56 }
 0x1c9   :  { %441 = vmatmul.mubr.msk.f32.vlgmr.msra.gmra.mrb[4].mxu0 %vm185_vm1, %v287_v57 }
 0x29c   :  { %v363_v59 = vpop.f32.mrb[4].mxu0 }
 0x29d   :  { %v364_v60 = vadd.f32 %v363_v59, %v292_v58  ;;  %v442_v61 = vpop.f32.mrb[5].mxu0 }
 0x29f   :  { %v391_v62 = vmul.f32 -1.442695, %v364_v60 }
 0x2a1   :  { %463 = vpow2.f32 %v391_v62 }
 0x2ab   :  { %v464_v63 = vpop.eup %463 }
 0x2ac   :  { %v373_v0 = vadd.f32 1.0, %v464_v63 }
 0x2ae   :  { %465 = vrcp.f32 %v373_v0 }
 0x2b8   :  { %v466_v3 = vpop.eup %465 }
 0x2b9   :  { %v376_v4 = vsel %vm369_vm3, %v466_v3, %v364_v60 }
 0x2ba   :  { %377 = vst [vmem:[%s587_s7] sm:$0xff] %v376_v4 }

</bundles_post_ra>
